<compile_context>
chip_gen: v5e
topology: v5e:2x2
jax: 0.10.0
libtpu: 0.0.40
codegen_flags: <defaults>
</compile_context>

<pallas_src>
import jax
import jax.numpy as jnp
from jax import lax
from jax.experimental import pallas as pl
from jax.experimental.pallas import tpu as pltpu


_LANES = 128          # lane-dense flat-view width (multiple of 128)
_TINY_ELEMS = 4096    # at/below this, skip Pallas (launch overhead dominates)


def _round_up(x, m):
    return -(-x // m) * m


def _reference_loss(pos_indicator, predicts, targets):
    """Pure-JAX reference mirroring the PyTorch forward (also the tiny path)."""
    n = jnp.sum(pos_indicator.astype(jnp.float32))
    diff = predicts.astype(jnp.float32) - targets.astype(jnp.float32)
    absd = jnp.abs(diff)
    elem = jnp.where(absd < 1.0, 0.5 * diff * diff, absd - 0.5)
    per_box = jnp.sum(elem, axis=-1)
    return (jnp.sum(per_box * pos_indicator.astype(jnp.float32)) / n).astype(
        jnp.float32)


def _make_kernel(rows, block_rows, ragged):
    """rows/block_rows are static Python ints; ragged => rows % block_rows != 0."""

    def kernel(pred_ref, tgt_ref, mask_ref, out_ref):
        pred = pred_ref[...].astype(jnp.float32)      # (rb, LANES)
        tgt = tgt_ref[...].astype(jnp.float32)        # (rb, LANES)
        keep = mask_ref[...] != 0                     # (rb, LANES) bool

        if ragged:
            # The last grid step's block extends past the (rows, LANES) view;
            # its out-of-range rows hold garbage for pred/tgt AND mask, so gate
            # them with a per-row validity column (static threshold, no
            # scalar prefetch needed).
            row_ids = lax.broadcasted_iota(jnp.int32, (block_rows, 1), 0)
            valid = row_ids < (rows - pl.program_id(0) * block_rows)
            keep = jnp.logical_and(keep, valid)       # broadcast over lanes

        # Select (never multiply) so NaN/Inf in masked-out or garbage elements
        # cannot propagate; applying it to diff makes a trailing select
        # unnecessary since smooth_l1(0) == 0.
        diff = jnp.where(keep, pred - tgt, 0.0)
        absd = jnp.abs(diff)
        elem = jnp.where(absd < 1.0, 0.5 * diff * diff, absd - 0.5)

        # One sublane reduction each for the loss and the kept-element count;
        # the cross-lane reduce (and /4 for the count) happens in plain JAX.
        loss_row = jnp.sum(elem, axis=0, keepdims=True)                      # (1, LANES)
        cnt_row = jnp.sum(keep.astype(jnp.float32), axis=0, keepdims=True)   # (1, LANES)
        out_ref[...] = jnp.concatenate([loss_row, cnt_row], axis=0)[None]    # (1,2,LANES)

    return kernel


def _pick_block_rows(rows):
    """Rows per grid step: big blocks (amortize ~0.35us/step), capped so the
    'parallel' grid keeps >= 2 steps for v7x's two TensorCores."""
    per_input_bytes = 2 * 1024 * 1024        # ~2 MiB f32 tile -> ~9 MiB VMEM total
    try:
        vmem = getattr(pltpu.get_tpu_info(), "vmem_capacity_bytes", None)
        if vmem is not None and vmem <= 96 * 1024 * 1024:
            # v7x-class: half the VMEM but ~2.3x the HBM BW -> bigger blocks
            # (~18 MiB total, still under the 32 MiB default scoped limit).
            per_input_bytes = 4 * 1024 * 1024
    except Exception:
        pass
    rb = per_input_bytes // (_LANES * 4)
    rb = min(rb, _round_up(pl.cdiv(rows, 2), 32))   # grid_n >= 2 when possible
    return max(32, (rb // 32) * 32)                 # int8 mask wants sublanes % 32 == 0


@jax.jit
def localization_loss(pos_indicator, predicts, targets):
    """
    pos_indicator: (B, D) bool
    predicts:      (B, D, 4) float
    targets:       (B, D, 4) float
    returns scalar float32 loss (inf/nan if no positives, as in PyTorch).
    """
    B, D = pos_indicator.shape
    assert predicts.shape == (B, D, 4) and targets.shape == (B, D, 4)
    total = B * D * 4

    if total <= _TINY_ELEMS:
        # A pallas_call launch + HBM round trips can't amortize at this size;
        # XLA fuses the whole thing into one trivial pass.
        return _reference_loss(pos_indicator, predicts, targets)

    # Lane-dense flat views: free row-major reshapes, no transposes, no copies.
    pred = predicts.reshape(-1)
    tgt = targets.reshape(-1)
    # Per-element int8 mask; with allow_input_fusion its broadcast/astype
    # producer can fuse into the pallas_call instead of hitting HBM first.
    mask = jnp.broadcast_to(pos_indicator[..., None],
                            (B, D, 4)).reshape(-1).astype(jnp.int8)

    pad = (-total) % _LANES
    if pad:
        # TODO(synk): only hit when B*D % 32 != 0; jnp.pad is a full HBM copy
        # of pred/tgt.  A truly zero-copy ragged tail would need a 1-D
        # BlockSpec view or a manual-DMA path.
        pred = jnp.pad(pred, (0, pad))
        tgt = jnp.pad(tgt, (0, pad))
        mask = jnp.pad(mask, (0, pad))   # zero-padded mask never contributes

    rows = (total + pad) // _LANES
    rb = _pick_block_rows(rows)
    grid_n = pl.cdiv(rows, rb)
    ragged = (rows % rb) != 0

    pred2 = pred.reshape(rows, _LANES)
    tgt2 = tgt.reshape(rows, _LANES)
    mask2 = mask.reshape(rows, _LANES)

    partials = pl.pallas_call(
        _make_kernel(rows, rb, ragged),
        out_shape=jax.ShapeDtypeStruct((grid_n, 2, _LANES), jnp.float32),
        grid_spec=pltpu.PrefetchScalarGridSpec(
            num_scalar_prefetch=0,
            grid=(grid_n,),
            in_specs=[
                pl.BlockSpec((rb, _LANES), lambda i: (i, 0)),
                pl.BlockSpec((rb, _LANES), lambda i: (i, 0)),
                pl.BlockSpec((rb, _LANES), lambda i: (i, 0)),
            ],
            out_specs=pl.BlockSpec((1, 2, _LANES), lambda i: (i, 0, 0)),
        ),
        compiler_params=pltpu.CompilerParams(
            dimension_semantics=("parallel",),
            allow_input_fusion=[False, False, True],
        ),
    )(pred2, tgt2, mask2)

    loss_sum = jnp.sum(partials[:, 0, :])
    n = jnp.sum(partials[:, 1, :]) * 0.25   # each positive box counted 4x
    # Matches PyTorch exactly: division by N with no clamping.
    return (loss_sum / n).astype(jnp.float32)


if __name__ == "__main__":
    def check(key, B, D, note):
        k1, k2, k3 = jax.random.split(key, 3)
        pos = jax.random.bernoulli(k1, p=0.25, shape=(B, D))
        pr = jax.random.normal(k2, (B, D, 4), dtype=jnp.float32)
        tg = jax.random.normal(k3, (B, D, 4), dtype=jnp.float32)
        out = jax.block_until_ready(localization_loss(pos, pr, tg))
        ref = _reference_loss(pos, pr, tg)
        assert jnp.allclose(out, ref, rtol=5e-5, atol=1e-6), (note, out, ref)

    root = jax.random.PRNGKey(0)
    ks = jax.random.split(root, 4)
    check(ks[0], 8, 1024, "multi-block, exact division")   # grid=2, no raggedness
    check(ks[1], 2, 2512, "ragged last block")             # rows=157 -> in-kernel row mask
    check(ks[2], 3, 1000, "lane pad + ragged")             # B*D % 32 != 0 -> small pad path
    check(ks[3], 2, 256, "tiny: fused XLA bypass")         # below Pallas threshold
    print("KERNEL_OK")
</pallas_src>

<mosaic_0001>
module attributes {stable_mosaic.version = 11 : i64} {
  func.func @kernel(%arg0: i32, %arg1: memref<128x128xf32, #tpu.memory_space<vmem>>, %arg2: memref<128x128xf32, #tpu.memory_space<vmem>>, %arg3: memref<128x128xi8, #tpu.memory_space<vmem>>, %arg4: memref<1x2x128xf32, #tpu.memory_space<vmem>>) attributes {dimension_semantics = [#tpu.dimension_semantics<parallel>], iteration_bounds = array<i64: 2>, scalar_prefetch = 0 : i64, scratch_operands = 0 : i64, tpu.core_type = #tpu.core_type<tc>, window_params = [{transform_indices = @transform_0, window_bounds = array<i64: 128, 128>}, {transform_indices = @transform_1, window_bounds = array<i64: 128, 128>}, {transform_indices = @transform_2, window_bounds = array<i64: 128, 128>}, {transform_indices = @transform_3, window_bounds = array<i64: 1, 2, 128>}]} {
    %c0 = arith.constant 0 : index
    %c0_0 = arith.constant 0 : index
    %0 = vector.load %arg1[%c0, %c0_0] : memref<128x128xf32, #tpu.memory_space<vmem>>, vector<128x128xf32>
    %c0_1 = arith.constant 0 : index
    %c0_2 = arith.constant 0 : index
    %1 = vector.load %arg2[%c0_1, %c0_2] : memref<128x128xf32, #tpu.memory_space<vmem>>, vector<128x128xf32>
    %c0_3 = arith.constant 0 : index
    %c0_4 = arith.constant 0 : index
    %2 = vector.load %arg3[%c0_3, %c0_4] : memref<128x128xi8, #tpu.memory_space<vmem>>, vector<128x128xi8>
    %c0_i8 = arith.constant 0 : i8
    %3 = vector.broadcast %c0_i8 : i8 to vector<128x128xi8>
    %4 = arith.cmpi ne, %2, %3 : vector<128x128xi8>
    %5 = arith.subf %0, %1 : vector<128x128xf32>
    %cst = arith.constant 0.000000e+00 : f32
    %6 = vector.broadcast %cst : f32 to vector<128x128xf32>
    %7 = arith.select %4, %5, %6 : vector<128x128xi1>, vector<128x128xf32>
    %8 = math.absf %7 : vector<128x128xf32>
    %cst_5 = arith.constant 1.000000e+00 : f32
    %9 = vector.broadcast %cst_5 : f32 to vector<128x128xf32>
    %10 = arith.cmpf olt, %8, %9 : vector<128x128xf32>
    %cst_6 = arith.constant 5.000000e-01 : f32
    %11 = vector.broadcast %cst_6 : f32 to vector<128x128xf32>
    %12 = arith.mulf %11, %7 : vector<128x128xf32>
    %13 = arith.mulf %12, %7 : vector<128x128xf32>
    %cst_7 = arith.constant 5.000000e-01 : f32
    %14 = vector.broadcast %cst_7 : f32 to vector<128x128xf32>
    %15 = arith.subf %8, %14 : vector<128x128xf32>
    %16 = arith.select %10, %13, %15 : vector<128x128xi1>, vector<128x128xf32>
    %cst_8 = arith.constant dense<0.000000e+00> : vector<128xf32>
    %17 = vector.multi_reduction <add>, %16, %cst_8 [0] : vector<128x128xf32> to vector<128xf32>
    %18 = vector.shape_cast %17 : vector<128xf32> to vector<1x128xf32>
    %19 = arith.extui %4 : vector<128x128xi1> to vector<128x128xi32>
    %20 = arith.sitofp %19 : vector<128x128xi32> to vector<128x128xf32>
    %cst_9 = arith.constant dense<0.000000e+00> : vector<128xf32>
    %21 = vector.multi_reduction <add>, %20, %cst_9 [0] : vector<128x128xf32> to vector<128xf32>
    %22 = vector.shape_cast %21 : vector<128xf32> to vector<1x128xf32>
    %23 = tpu.concatenate %18, %22 in 0 : vector<1x128xf32>, vector<1x128xf32> -> vector<2x128xf32>
    %24 = vector.shape_cast %23 : vector<2x128xf32> to vector<1x2x128xf32>
    %c0_10 = arith.constant 0 : index
    %c0_11 = arith.constant 0 : index
    %c0_12 = arith.constant 0 : index
    %25 = vector.load %arg4[%c0_10, %c0_11, %c0_12] : memref<1x2x128xf32, #tpu.memory_space<vmem>>, vector<1x2x128xf32>
    tpu.vector_store %arg4[%c0_10, %c0_11, %c0_12], %24 {strides = array<i32>} : memref<1x2x128xf32, #tpu.memory_space<vmem>>, vector<1x2x128xf32>,
    return
  }
  func.func @transform_0(%arg0: i32) -> (i32, i32) {
    %c0_i32 = arith.constant 0 : i32
    %c0_i32_0 = arith.constant 0 : i32
    return %arg0, %c0_i32 : i32, i32
  }
  func.func @transform_1(%arg0: i32) -> (i32, i32) {
    %c0_i32 = arith.constant 0 : i32
    %c0_i32_0 = arith.constant 0 : i32
    return %arg0, %c0_i32 : i32, i32
  }
  func.func @transform_2(%arg0: i32) -> (i32, i32) {
    %c0_i32 = arith.constant 0 : i32
    %c0_i32_0 = arith.constant 0 : i32
    return %arg0, %c0_i32 : i32, i32
  }
  func.func @transform_3(%arg0: i32) -> (i32, i32, i32) {
    %c0_i32 = arith.constant 0 : i32
    %c0_i32_0 = arith.constant 0 : i32
    %c0_i32_1 = arith.constant 0 : i32
    return %arg0, %c0_i32, %c0_i32_0 : i32, i32, i32
  }
}

</mosaic_0001>

<bundles_post_ra>
// kernel: localization_loss.1
= control target key start
LH: loop header
LB: loop body
LE: loop exit
PB: predicated region body
PF: predicated region fallthrough
CT: control target
= control target key end

     0   :  { %s741_s12 = smov 0   ;;  %s1370_s0 = inlined_call_operand.vmem [shape: f32[256,128], index: 0, kind: input, shape index: {}]   ;;  %s1371_s1 = inlined_call_operand.vmem [shape: f32[256,128], index: 1, kind: input, shape index: {}]   ;;  %s1372_s2 = inlined_call_operand.vmem [shape: s8[256,128], index: 2, kind: input, shape index: {}]   ;;  %s1373_s3 = inlined_call_operand.vmem [shape: f32[2,2,128], index: 3, kind: output, shape index: {}]  }
   0x1 LB: > { %s747_s13 = sadd.s32 4294967295, %s717_s12   ;;  %p659_p0 = scmp.ge.s32.totalorder %s717_s12, 1  ;;  %s717_s12 = sphi %s741_s12, %s13_s12  }
   0x2   : > { %p160_p1 = scmp.lt.s32.totalorder %s717_s12, 3 }
   0x4   : > { %p161_p2 = pnand %p659_p0, %p160_p1 }
   0x6   : > { %164 = sbr.rel (%p161_p2) target bundleno = 123 (0x7b), region = 32 }
   0xb   : > { %s660_s14 = sshll.u32 %s747_s13, 4  ;;  %s664_s15 = sshll.u32 %s747_s13, 2  ;;  %v1374_v44 = vmov 0  }
   0xc   : > { %p194_p3 = scmp.lt.s32.totalorder %s660_s14, 31  ;;  %p206_p4 = scmp.lt.s32.totalorder %s664_s15, 7 }
   0xd   : > { %p211_p5 = scmp.lt.s32.totalorder %s747_s13, 1 }
   0xe   : > { %s1504_s14 = smov (!%p194_p3, %s660_s14), 31  ;;  %s1506_s15 = smov (!%p206_p4, %s664_s15), 7 }
   0xf   : > { %s661_s16 = sshll.u32 %s1504_s14, 3  ;;  %s665_s17 = sshll.u32 %s1506_s15, 3 }
  0x10   : > { %s756_s20 = scalar_lea.vmem %s1370_s0, %s661_s16  ;;  %s761_s23 = scalar_lea.vmem %s1371_s1, %s661_s16 }
  0x11   : > { %s766_s26 = scalar_lea.vmem %s1372_s2, %s665_s17  ;;  %v769_v0 = vld [vmem:[%s756_s20] sm:$0xff]  ;;  %v772_v1 = vld [vmem:[%s756_s20 + $0x8] sm:$0xff]  ;;  %v775_v2 = vld [vmem:[%s756_s20 + $0x10] sm:$0xff]  ;;  %s1508_s13 = smov (!%p211_p5, %s747_s13), 1 }
  0x12   : > { %v778_v3 = vld [vmem:[%s756_s20 + $0x18] sm:$0xff]  ;;  %v781_v4 = vld [vmem:[%s756_s20 + $0x20] sm:$0xff]  ;;  %v784_v5 = vld [vmem:[%s756_s20 + $0x28] sm:$0xff]  ;;  %s666_s27 = sshll.u32 %s1508_s13, 1 }
  0x13   : > { %v787_v6 = vld [vmem:[%s761_s23] sm:$0xff]  ;;  %v790_v7 = vld [vmem:[%s761_s23 + $0x8] sm:$0xff]  ;;  %v794_v9 = vld [vmem:[%s756_s20 + $0x30] sm:$0xff]  ;;  %s214_s30 = scalar_lea.vmem %s1373_s3, %s666_s27 }
  0x14   : > { %v249_v8 = vld [vmem:[%s766_s26] sm:$0xff]  ;;  %v797_v10 = vld [vmem:[%s756_s20 + $0x38] sm:$0xff]  ;;  %v800_v11 = vld [vmem:[%s761_s23 + $0x10] sm:$0xff] }
  0x15   : > { %v803_v12 = vld [vmem:[%s761_s23 + $0x18] sm:$0xff]  ;;  %v806_v13 = vld [vmem:[%s761_s23 + $0x20] sm:$0xff]  ;;  %v812_v15 = vld [vmem:[%s756_s20 + $0x48] sm:$0xff]  ;;  %vm253_vm0 = vnez %v249_v8 }
  0x16   : > { %v809_v14 = vld [vmem:[%s756_s20 + $0x40] sm:$0xff]  ;;  %v815_v16 = vld [vmem:[%s756_s20 + $0x50] sm:$0xff]  ;;  %v818_v17 = vld [vmem:[%s761_s23 + $0x28] sm:$0xff]  ;;  %v273_v45 = vsel %vm253_vm0, 16843009, %v1374_v44 }
  0x17   : > { %v821_v18 = vld [vmem:[%s761_s23 + $0x30] sm:$0xff]  ;;  %v250_v19 = vld [vmem:[%s766_s26 + $0x8] sm:$0xff]  ;;  %v825_v20 = vld [vmem:[%s756_s20 + $0x58] sm:$0xff]  ;;  %v277_v56 = vunpack.c.0.s8 %v273_v45  ;;  %v278_v58 = vunpack.c.1.s8 %v273_v45  ;;  %v279_v59 = vunpack.c.2.s8 %v273_v45  ;;  %v280_v60 = vunpack.c.3.s8 %v273_v45 }
  0x18   : > { %v828_v21 = vld [vmem:[%s756_s20 + $0x60] sm:$0xff]  ;;  %v831_v22 = vld [vmem:[%s756_s20 + $0x68] sm:$0xff]  ;;  %v834_v23 = vld [vmem:[%s761_s23 + $0x38] sm:$0xff]  ;;  %vm254_vm1 = vnez %v250_v19 }
  0x19   : > { %v837_v24 = vld [vmem:[%s761_s23 + $0x40] sm:$0xff]  ;;  %v251_v25 = vld [vmem:[%s766_s26 + $0x10] sm:$0xff]  ;;  %v844_v27 = vld [vmem:[%s761_s23 + $0x48] sm:$0xff]  ;;  %v274_v52 = vsel %vm254_vm1, 16843009, %v1374_v44  ;;  %v293_v54 = vpack.c.b16 %v277_v56, %v277_v56  ;;  %v295_v47 = vpack.c.b16 %v278_v58, %v278_v58  ;;  %v297_v46 = vpack.c.b16 %v279_v59, %v279_v59 }
  0x1a   : > { %v841_v26 = vld [vmem:[%s756_s20 + $0x70] sm:$0xff]  ;;  %v252_v29 = vld [vmem:[%s766_s26 + $0x18] sm:$0xff]  ;;  %v860_v34 = vld [vmem:[%s761_s23 + $0x60] sm:$0xff]  ;;  %vm255_vm2 = vnez %v251_v25  ;;  %v281_v61 = vunpack.c.0.s8 %v274_v52  ;;  %v282_v62 = vunpack.c.1.s8 %v274_v52  ;;  %v283_v63 = vunpack.c.2.s8 %v274_v52 }
  0x1b   : > { %1384 = vst [vmem:[#allocation2_spill] sm:$0xff] %v841_v26  ;;  %v847_v28 = vld [vmem:[%s761_s23 + $0x50] sm:$0xff]  ;;  %v857_v33 = vld [vmem:[%s761_s23 + $0x58] sm:$0xff]  ;;  %v863_v35 = vld [vmem:[%s761_s23 + $0x68] sm:$0xff]  ;;  %vm256_vm3 = vnez %v252_v29  ;;  %v275_v55 = vsel %vm255_vm2, 16843009, %v1374_v44  ;;  %v284_v8 = vunpack.c.3.s8 %v274_v52  ;;  %v299_v43 = vpack.c.b16 %v280_v60, %v280_v60 }
  0x1c   : > { %v872_v39 = vld [vmem:[%s756_s20 + $0x78] sm:$0xff]  ;;  %v875_v40 = vld [vmem:[%s761_s23 + $0x70] sm:$0xff]  ;;  %v276_v57 = vsel %vm256_vm3, 16843009, %v1374_v44  ;;  %v285_v19 = vunpack.c.0.s8 %v275_v55  ;;  %v286_v25 = vunpack.c.1.s8 %v275_v55  ;;  %v287_v29 = vunpack.c.2.s8 %v275_v55 }
  0x1d   : > { %1385 = vst [vmem:[#allocation3_spill] sm:$0xff] %v872_v39  ;;  %v878_v41 = vld [vmem:[%s761_s23 + $0x78] sm:$0xff]  ;;  %v288_v51 = vunpack.c.3.s8 %v275_v55  ;;  %v289_v53 = vunpack.c.0.s8 %v276_v57  ;;  %v290_v50 = vunpack.c.1.s8 %v276_v57  ;;  %v291_v49 = vunpack.c.2.s8 %v276_v57 }
  0x1e   : > { %1386 = vst [vmem:[#allocation4_spill] sm:$0xff] %v875_v40  ;;  %v292_v48 = vunpack.c.3.s8 %v276_v57  ;;  %v301_v42 = vpack.c.b16 %v281_v61, %v281_v61  ;;  %v303_v38 = vpack.c.b16 %v282_v62, %v282_v62  ;;  %v305_v37 = vpack.c.b16 %v283_v63, %v283_v63 }
  0x1f   : > { %1387 = vst [vmem:[#allocation5_spill] sm:$0xff] %v878_v41  ;;  %v307_v45 = vpack.c.b16 %v284_v8, %v284_v8  ;;  %v309_v36 = vpack.c.b16 %v285_v19, %v285_v19  ;;  %v311_v32 = vpack.c.b16 %v286_v25, %v286_v25  ;;  %v313_v31 = vpack.c.b16 %v287_v29, %v287_v29 }
  0x20   : > { %v315_v52 = vpack.c.b16 %v288_v51, %v288_v51  ;;  %v294_v30 = vpack.c.b8 %v293_v54, %v293_v54  ;;  %v317_v44 = vpack.c.b16 %v289_v53, %v289_v53  ;;  %v319_v41 = vpack.c.b16 %v290_v50, %v290_v50 }
  0x21   : > { %v321_v55 = vpack.c.b16 %v291_v49, %v291_v49  ;;  %v296_v39 = vpack.c.b8 %v295_v47, %v295_v47  ;;  %v298_v40 = vpack.c.b8 %v297_v46, %v297_v46  ;;  %v300_v26 = vpack.c.b8 %v299_v43, %v299_v43 }
  0x22   : > { %v323_v56 = vpack.c.b16 %v292_v48, %v292_v48  ;;  %v302_v57 = vpack.c.b8 %v301_v42, %v301_v42  ;;  %v304_v58 = vpack.c.b8 %v303_v38, %v303_v38  ;;  %v306_v59 = vpack.c.b8 %v305_v37, %v305_v37 }
  0x23   : > { %v308_v60 = vpack.c.b8 %v307_v45, %v307_v45  ;;  %v310_v61 = vpack.c.b8 %v309_v36, %v309_v36  ;;  %v312_v62 = vpack.c.b8 %v311_v32, %v311_v32  ;;  %v314_v63 = vpack.c.b8 %v313_v31, %v313_v31 }
  0x24   : > { %v316_v8 = vpack.c.b8 %v315_v52, %v315_v52  ;;  %v318_v19 = vpack.c.b8 %v317_v44, %v317_v44  ;;  %v320_v25 = vpack.c.b8 %v319_v41, %v319_v41  ;;  %v322_v29 = vpack.c.b8 %v321_v55, %v321_v55 }
  0x25   : > { %vm325_vm4 = vnez %v294_v30  ;;  %v324_v51 = vpack.c.b8 %v323_v56, %v323_v56  ;;  %vm326_vm5 = vnez %v296_v39  ;;  %vm906_vm6 = vnez %v298_v40 }
  0x26   : > { %vm910_vm7 = vnez %v300_v26  ;;  %vm914_vm8 = vnez %v302_v57  ;;  %vm918_vm9 = vnez %v304_v58  ;;  %vm922_vm10 = vnez %v306_v59 }
  0x27   : > { %vm926_vm11 = vnez %v308_v60  ;;  %vm930_vm12 = vnez %v310_v61  ;;  %vm934_vm13 = vnez %v312_v62  ;;  %vm938_vm14 = vnez %v314_v63 }
  0x28   : > { %v1406_v39 = vmov 0   ;;  %vm943_vm15 = vnez %v316_v8  ;;  %vm947_vm0 = vnez %v318_v19  ;;  %vm951_vm1 = vnez %v320_v25 }
  0x29   : > { %v341_v40 = vsel %vm325_vm4, 16843009, %v1406_v39  ;;  %v342_v46 = vsel %vm326_vm5, 16843009, %v1406_v39  ;;  %vm956_vm2 = vnez %v322_v29  ;;  %vm960_vm3 = vnez %v324_v51 }
  0x2a   : > { %v343_v50 = vsel %vm906_vm6, 16843009, %v1406_v39  ;;  %v344_v53 = vsel %vm910_vm7, 16843009, %v1406_v39  ;;  %v345_v54 = vsel %vm914_vm8, 16843009, %v1406_v39  ;;  %v357_v55 = vunpack.c.0.s8 %v341_v40 }
  0x2b   : > { %v346_v45 = vsel %vm918_vm9, 16843009, %v1406_v39  ;;  %v347_v52 = vsel %vm922_vm10, 16843009, %v1406_v39  ;;  %v348_v56 = vsel %vm926_vm11, 16843009, %v1406_v39  ;;  %v358_v59 = vunpack.c.0.s8 %v342_v46 }
  0x2c   : > { %v349_v57 = vsel %vm930_vm12, 16843009, %v1406_v39  ;;  %v350_v58 = vsel %vm934_vm13, 16843009, %v1406_v39  ;;  %v351_v60 = vsel %vm938_vm14, 16843009, %v1406_v39  ;;  %v359_v63 = vunpack.c.0.s8 %v343_v50 }
  0x2d   : > { %v352_v61 = vsel %vm943_vm15, 16843009, %v1406_v39  ;;  %v353_v62 = vsel %vm947_vm0, 16843009, %v1406_v39  ;;  %v354_v8 = vsel %vm951_vm1, 16843009, %v1406_v39  ;;  %v360_v29 = vunpack.c.0.s8 %v344_v53 }
  0x2e   : > { %v355_v19 = vsel %vm956_vm2, 16843009, %v1406_v39  ;;  %v356_v25 = vsel %vm960_vm3, 16843009, %v1406_v39  ;;  %v361_v51 = vunpack.c.0.s8 %v345_v54  ;;  %v362_v49 = vunpack.c.0.s8 %v346_v45 }
  0x2f   : > { %v363_v43 = vunpack.c.0.s8 %v347_v52  ;;  %v364_v37 = vunpack.c.0.s8 %v348_v56  ;;  %v365_v31 = vunpack.c.0.s8 %v349_v57  ;;  %v366_v30 = vunpack.c.0.s8 %v350_v58 }
  0x30   : > { %v367_v32 = vunpack.c.0.s8 %v351_v60  ;;  %v368_v26 = vunpack.c.0.s8 %v352_v61  ;;  %v369_v36 = vunpack.c.0.s8 %v353_v62  ;;  %v370_v38 = vunpack.c.0.s8 %v354_v8 }
  0x31   : > { %v371_v40 = vunpack.c.0.s8 %v355_v19  ;;  %v372_v41 = vunpack.c.0.s8 %v356_v25  ;;  %vm1006_vm4 = vcmp.ne.s32.totalorder %v357_v55, 0  ;;  %vm1010_vm5 = vcmp.ne.s32.totalorder %v358_v59, 0 }
  0x32   : > { %vm1014_vm6 = vcmp.ne.s32.totalorder %v359_v63, 0  ;;  %vm1018_vm7 = vcmp.ne.s32.totalorder %v360_v29, 0  ;;  %vm1022_vm8 = vcmp.ne.s32.totalorder %v361_v51, 0  ;;  %vm1026_vm9 = vcmp.ne.s32.totalorder %v362_v49, 0 }
  0x33   : > { %vm1030_vm10 = vcmp.ne.s32.totalorder %v363_v43, 0  ;;  %vm1034_vm11 = vcmp.ne.s32.totalorder %v364_v37, 0  ;;  %vm1038_vm12 = vcmp.ne.s32.totalorder %v365_v31, 0  ;;  %vm1042_vm13 = vcmp.ne.s32.totalorder %v366_v30, 0  ;;  %v1463_v43 = vld [vmem:[#allocation2_spill] sm:$0xff]  ;;  %v1464_v37 = vld [vmem:[#allocation4_spill] sm:$0xff] }
  0x34   : > { %vm1046_vm14 = vcmp.ne.s32.totalorder %v367_v32, 0  ;;  %vm1050_vm15 = vcmp.ne.s32.totalorder %v368_v26, 0  ;;  %vm1054_vm0 = vcmp.ne.s32.totalorder %v369_v36, 0  ;;  %v1441_v56 = vmov 0  ;;  %v1466_v26 = vld [vmem:[#allocation3_spill] sm:$0xff]  ;;  %v1467_v36 = vld [vmem:[#allocation5_spill] sm:$0xff] }
  0x35   : > { %v1442_v56 = vsel %vm1054_vm0, 4294967295, %v1441_v56  ;;  %vm1058_vm1 = vcmp.ne.s32.totalorder %v370_v38, 0  ;;  %v1443_v57 = vmov 0  ;;  %vm1062_vm2 = vcmp.ne.s32.totalorder %v371_v40, 0 }
  0x36   : > { %v1444_v57 = vsel %vm1058_vm1, 4294967295, %v1443_v57  ;;  %v1445_v58 = vmov 0  ;;  %vm1066_vm3 = vcmp.ne.s32.totalorder %v372_v41, 0  ;;  %v1447_v59 = vmov 0 }
  0x37   : > { %v1446_v58 = vsel %vm1062_vm2, 4294967295, %v1445_v58  ;;  %v1448_v59 = vsel %vm1066_vm3, 4294967295, %v1447_v59  ;;  %v1449_v60 = vsub.f32 %v769_v0, %v787_v6  ;;  %v1450_v62 = vsub.f32 %v772_v1, %v790_v7 }
  0x38   : > { %v1451_v8 = vsub.f32 %v775_v2, %v800_v11  ;;  %v1452_v25 = vsub.f32 %v778_v3, %v803_v12  ;;  %v1453_v6 = vsub.f32 %v781_v4, %v806_v13  ;;  %v1454_v7 = vsub.f32 %v784_v5, %v818_v17 }
  0x39   : > { %v389_v61 = vsel %vm1006_vm4, %v1449_v60, 0.0  ;;  %v390_v63 = vsel %vm1010_vm5, %v1450_v62, 0.0  ;;  %v1455_v11 = vsub.f32 %v794_v9, %v821_v18  ;;  %v1456_v12 = vsub.f32 %v797_v10, %v834_v23 }
  0x3a   : > { %v391_v19 = vsel %vm1014_vm6, %v1451_v8, 0.0  ;;  %v392_v0 = vsel %vm1018_vm7, %v1452_v25, 0.0  ;;  %v393_v1 = vsel %vm1022_vm8, %v1453_v6, 0.0  ;;  %v394_v2 = vsel %vm1026_vm9, %v1454_v7, 0.0 }
  0x3b   : > { %v1105_v3 = vsel %vm1030_vm10, %v1455_v11, 0.0  ;;  %v1112_v4 = vsel %vm1034_vm11, %v1456_v12, 0.0  ;;  %v1457_v5 = vsub.f32 %v809_v14, %v837_v24  ;;  %v1458_v9 = vsub.f32 %v812_v15, %v844_v27 }
  0x3c   : > { %v1459_v10 = vsub.f32 %v815_v16, %v847_v28  ;;  %v1460_v14 = vsub.f32 %v825_v20, %v857_v33  ;;  %v405_v24 = vand.u32 2147483647, %v389_v61  ;;  %v406_v15 = vand.u32 2147483647, %v390_v63 }
  0x3d   : > { %v1119_v13 = vsel %vm1038_vm12, %v1457_v5, 0.0  ;;  %v1126_v17 = vsel %vm1042_vm13, %v1458_v9, 0.0  ;;  %v437_v27 = vmul.f32 0.5, %v389_v61  ;;  %v438_v29 = vmul.f32 0.5, %v390_v63 }
  0x3e   : > { %v1133_v18 = vsel %vm1046_vm14, %v1459_v10, 0.0  ;;  %v1140_v23 = vsel %vm1050_vm15, %v1460_v14, 0.0  ;;  %v1461_v51 = vsub.f32 %v828_v21, %v860_v34  ;;  %v1462_v28 = vsub.f32 %v831_v22, %v863_v35 }
  0x3f   : > { %v407_v33 = vand.u32 2147483647, %v391_v19  ;;  %v408_v49 = vand.u32 2147483647, %v392_v0  ;;  %v1465_v31 = vsub.f32 %v1463_v43, %v1464_v37  ;;  %v409_v21 = vand.u32 2147483647, %v393_v1 }
  0x40   : > { %v1147_v16 = vsel %vm1054_vm0, %v1461_v51, 0.0  ;;  %v1154_v20 = vsel %vm1058_vm1, %v1462_v28, 0.0  ;;  %v410_v34 = vand.u32 2147483647, %v394_v2  ;;  %v439_v32 = vmul.f32 0.5, %v391_v19 }
  0x41   : > { %v1161_v30 = vsel %vm1062_vm2, %v1465_v31, 0.0  ;;  %v1468_v38 = vsub.f32 %v1466_v26, %v1467_v36  ;;  %v411_v35 = vand.u32 2147483647, %v1105_v3  ;;  %v412_v40 = vand.u32 2147483647, %v1112_v4 }
  0x42   : > { %v440_v41 = vmul.f32 0.5, %v392_v0  ;;  %v453_v60 = vmul.f32 %v437_v27, %v389_v61  ;;  %v454_v62 = vmul.f32 %v438_v29, %v390_v63  ;;  %v667_v8 = vadd.f32 -0.5, %v405_v24 }
  0x43   : > { %v1168_v22 = vsel %vm1066_vm3, %v1468_v38, 0.0  ;;  %v668_v25 = vadd.f32 -0.5, %v406_v15  ;;  %v413_v6 = vand.u32 2147483647, %v1119_v13  ;;  %v414_v7 = vand.u32 2147483647, %v1126_v17 }
  0x44   : > { %vm1174_vm2 = vcmp.lt.f32.partialorder %v405_v24, 1.0  ;;  %vm1178_vm1 = vcmp.lt.f32.partialorder %v406_v15, 1.0  ;;  %v415_v5 = vand.u32 2147483647, %v1133_v18  ;;  %v441_v9 = vmul.f32 0.5, %v393_v1 }
  0x45   : > { %v455_v10 = vmul.f32 %v439_v32, %v391_v19  ;;  %v669_v61 = vadd.f32 -0.5, %v407_v33  ;;  %v416_v63 = vand.u32 2147483647, %v1140_v23  ;;  %v417_v14 = vand.u32 2147483647, %v1147_v16 }
  0x46   : > { %vm1185_vm3 = vcmp.lt.f32.partialorder %v407_v33, 1.0  ;;  %v442_v24 = vmul.f32 0.5, %v394_v2  ;;  %v456_v29 = vmul.f32 %v440_v41, %v392_v0  ;;  %v670_v51 = vadd.f32 -0.5, %v408_v49 }
  0x47   : > { %v485_v15 = vsel %vm1174_vm2, %v453_v60, %v667_v8  ;;  %v486_v28 = vsel %vm1178_vm1, %v454_v62, %v668_v25  ;;  %v418_v19 = vand.u32 2147483647, %v1154_v20  ;;  %v419_v43 = vand.u32 2147483647, %v1161_v30 }
  0x48   : > { %vm1195_vm0 = vcmp.lt.f32.partialorder %v408_v49, 1.0  ;;  %v443_v33 = vmul.f32 0.5, %v1105_v3  ;;  %v457_v31 = vmul.f32 %v441_v9, %v393_v1  ;;  %v671_v32 = vadd.f32 -0.5, %v409_v21 }
  0x49   : > { %v487_v0 = vsel %vm1185_vm3, %v455_v10, %v669_v61  ;;  %v420_v26 = vand.u32 2147483647, %v1168_v22  ;;  %vm1203_vm2 = vcmp.lt.f32.partialorder %v409_v21, 1.0  ;;  %v501_v38 = vadd.f32 %v486_v28, %v485_v15 }
  0x4a   : > { %v444_v41 = vmul.f32 0.5, %v1112_v4  ;;  %v458_v49 = vmul.f32 %v442_v24, %v394_v2  ;;  %v672_v60 = vadd.f32 -0.5, %v410_v34  ;;  %v488_v62 = vsel %vm1195_vm0, %v456_v29, %v670_v51 }
  0x4b   : > { %vm1210_vm1 = vcmp.lt.f32.partialorder %v410_v34, 1.0  ;;  %v502_v8 = vadd.f32 %v501_v38, %v487_v0  ;;  %v720_v25 = vmov 0.0   ;;  %v445_v2 = vmul.f32 0.5, %v1119_v13 }
  0x4c   : > { %v683_v21 = vsel %vm1006_vm4, 1.0, %v720_v25  ;;  %v684_v11 = vsel %vm1010_vm5, 1.0, %v720_v25  ;;  %v459_v12 = vmul.f32 %v443_v33, %v1105_v3  ;;  %v673_v9 = vadd.f32 -0.5, %v411_v35 }
  0x4d   : > { %v489_v34 = vsel %vm1203_vm2, %v457_v31, %v671_v32  ;;  %vm1224_vm0 = vcmp.lt.f32.partialorder %v411_v35, 1.0  ;;  %v446_v61 = vmul.f32 0.5, %v1126_v17  ;;  %v503_v42 = vadd.f32 %v502_v8, %v488_v62 }
  0x4e   : > { %v685_v44 = vsel %vm1014_vm6, 1.0, %v720_v25  ;;  %v460_v27 = vmul.f32 %v444_v41, %v1112_v4  ;;  %v674_v24 = vadd.f32 -0.5, %v412_v40  ;;  %v490_v3 = vsel %vm1210_vm1, %v458_v49, %v672_v60 }
  0x4f   : > { %v554_v29 = vadd.f32 %v684_v11, %v683_v21  ;;  %vm1235_vm4 = vcmp.lt.f32.partialorder %v412_v40, 1.0  ;;  %v447_v35 = vmul.f32 0.5, %v1133_v18  ;;  %v504_v15 = vadd.f32 %v503_v42, %v489_v34 }
  0x50   : > { %v686_v28 = vsel %vm1018_vm7, 1.0, %v720_v25  ;;  %v461_v39 = vmul.f32 %v445_v2, %v1119_v13  ;;  %v675_v37 = vadd.f32 -0.5, %v413_v6  ;;  %v491_v4 = vsel %vm1224_vm0, %v459_v12, %v673_v9 }
  0x51   : > { %v555_v33 = vadd.f32 %v685_v44, %v554_v29  ;;  %vm1246_vm5 = vcmp.lt.f32.partialorder %v413_v6, 1.0  ;;  %v448_v40 = vmul.f32 0.5, %v1140_v23  ;;  %v505_v32 = vadd.f32 %v504_v15, %v490_v3 }
  0x52   : > { %v687_v0 = vsel %vm1022_vm8, 1.0, %v720_v25  ;;  %v462_v46 = vmul.f32 %v446_v61, %v1126_v17  ;;  %v676_v36 = vadd.f32 -0.5, %v414_v7  ;;  %v492_v13 = vsel %vm1235_vm4, %v460_v27, %v674_v24 }
  0x53   : > { %v556_v38 = vadd.f32 %v686_v28, %v555_v33  ;;  %vm1257_vm6 = vcmp.lt.f32.partialorder %v414_v7, 1.0  ;;  %v449_v6 = vmul.f32 0.5, %v1147_v16  ;;  %v506_v49 = vadd.f32 %v505_v32, %v491_v4 }
  0x54   : > { %v688_v60 = vsel %vm1026_vm9, 1.0, %v720_v25  ;;  %v463_v47 = vmul.f32 %v447_v35, %v1133_v18  ;;  %v677_v17 = vadd.f32 -0.5, %v415_v5  ;;  %v493_v62 = vsel %vm1246_vm5, %v461_v39, %v675_v37 }
  0x55   : > { %v557_v1 = vadd.f32 %v687_v0, %v556_v38  ;;  %vm1272_vm7 = vcmp.lt.f32.partialorder %v415_v5, 1.0  ;;  %v450_v8 = vmul.f32 0.5, %v1154_v20  ;;  %v507_v21 = vadd.f32 %v506_v49, %v492_v13 }
  0x56   : > { %v689_v48 = vsel %vm1030_vm10, 1.0, %v720_v25  ;;  %v464_v11 = vmul.f32 %v448_v40, %v1140_v23  ;;  %v678_v2 = vadd.f32 -0.5, %v416_v63  ;;  %v494_v12 = vsel %vm1257_vm6, %v462_v46, %v676_v36 }
  0x57   : > { %v558_v18 = vadd.f32 %v688_v60, %v557_v1  ;;  %vm1287_vm8 = vcmp.lt.f32.partialorder %v416_v63, 1.0  ;;  %v451_v9 = vmul.f32 0.5, %v1161_v30  ;;  %v508_v34 = vadd.f32 %v507_v21, %v493_v62 }
  0x58   : > { %v690_v50 = vsel %vm1034_vm11, 1.0, %v720_v25  ;;  %v465_v10 = vmul.f32 %v449_v6, %v1147_v16  ;;  %v679_v61 = vadd.f32 -0.5, %v417_v14  ;;  %v495_v42 = vsel %vm1272_vm7, %v463_v47, %v677_v17 }
  0x59   : > { %v559_v23 = vadd.f32 %v689_v48, %v558_v18  ;;  %vm1302_vm9 = vcmp.lt.f32.partialorder %v417_v14, 1.0  ;;  %v452_v44 = vmul.f32 0.5, %v1168_v22  ;;  %v509_v27 = vadd.f32 %v508_v34, %v494_v12 }
  0x5a   : > { %v691_v53 = vsel %vm1038_vm12, 1.0, %v720_v25  ;;  %v466_v24 = vmul.f32 %v450_v8, %v1154_v20  ;;  %v680_v3 = vadd.f32 -0.5, %v418_v19  ;;  %v496_v29 = vsel %vm1287_vm8, %v464_v11, %v678_v2 }
  0x5b   : > { %v560_v16 = vadd.f32 %v690_v50, %v559_v23  ;;  %vm1317_vm10 = vcmp.lt.f32.partialorder %v418_v19, 1.0  ;;  %v510_v51 = vadd.f32 %v509_v27, %v495_v42  ;;  %v692_v54 = vsel %vm1042_vm13, 1.0, %v720_v25 }
  0x5c   : > { %v467_v35 = vmul.f32 %v451_v9, %v1161_v30  ;;  %v681_v15 = vadd.f32 -0.5, %v419_v43  ;;  %v497_v28 = vsel %vm1302_vm9, %v465_v10, %v679_v61  ;;  %vm1331_vm11 = vcmp.lt.f32.partialorder %v419_v43, 1.0 }
  0x5d   : > { %v561_v39 = vadd.f32 %v691_v53, %v560_v16  ;;  %v511_v19 = vadd.f32 %v510_v51, %v496_v29  ;;  %v693_v45 = vsel %vm1046_vm14, 1.0, %v720_v25  ;;  %v468_v37 = vmul.f32 %v452_v44, %v1168_v22 }
  0x5e   : > { %v682_v4 = vadd.f32 -0.5, %v420_v26  ;;  %v498_v33 = vsel %vm1317_vm10, %v466_v24, %v680_v3  ;;  %vm436_vm12 = vcmp.lt.f32.partialorder %v420_v26, 1.0  ;;  %v694_v43 = vsel %vm1050_vm15, 1.0, %v720_v25 }
  0x5f   : > { %v562_v31 = vadd.f32 %v692_v54, %v561_v39  ;;  %v512_v30 = vadd.f32 %v511_v19, %v497_v28  ;;  %v499_v52 = vsel %vm1331_vm11, %v467_v35, %v681_v15  ;;  %vm1499_vm13 = vnez %v1442_v56 }
  0x60   : > { %v695_v0 = vsel %vm1499_vm13, 1.0, %v720_v25  ;;  %v500_v46 = vsel %vm436_vm12, %v468_v37, %v682_v4  ;;  %vm1500_vm14 = vnez %v1444_v57  ;;  %vm1501_vm15 = vnez %v1446_v58 }
  0x61   : > { %v563_v40 = vadd.f32 %v693_v45, %v562_v31  ;;  %v513_v32 = vadd.f32 %v512_v30, %v498_v33  ;;  %v696_v22 = vsel %vm1500_vm14, 1.0, %v720_v25  ;;  %v697_v38 = vsel %vm1501_vm15, 1.0, %v720_v25 }
  0x62   : > { %vm1502_vm3 = vnez %v1448_v59  ;;  %vm575_vm2 = vcmask 1040384  }
  0x63   : > { %v564_v36 = vadd.f32 %v694_v43, %v563_v40  ;;  %v514_v13 = vadd.f32 %v513_v32, %v499_v52  ;;  %v698_v56 = vsel %vm1502_vm3, 1.0, %v720_v25 }
  0x65   : > { %v565_v55 = vadd.f32 %v695_v0, %v564_v36  ;;  %v515_v26 = vadd.f32 %v514_v13, %v500_v46 }
  0x67   : > { %v566_v41 = vadd.f32 %v696_v22, %v565_v55  ;;  %v516_v6 = vrot.slane %v515_v26, 4 }
  0x69   : > { %v567_v49 = vadd.f32 %v697_v38, %v566_v41  ;;  %v517_v60 = vadd.f32 %v516_v6, %v515_v26 }
  0x6b   : > { %v568_v47 = vadd.f32 %v698_v56, %v567_v49  ;;  %v518_v17 = vrot.slane %v517_v60, 2 }
  0x6d   : > { %v569_v57 = vrot.slane %v568_v47, 4  ;;  %v519_v62 = vadd.f32 %v518_v17, %v517_v60 }
  0x6f   : > { %v570_v1 = vadd.f32 %v569_v57, %v568_v47  ;;  %v520_v7 = vrot.slane %v519_v62, 1 }
  0x71   : > { %v571_v8 = vrot.slane %v570_v1, 2  ;;  %v521_v58 = vadd.f32 %v520_v7, %v519_v62 }
  0x73   : > { %v572_v21 = vadd.f32 %v571_v8, %v570_v1 }
  0x75   : > { %v573_v48 = vrot.slane %v572_v21, 1 }
  0x77   : > { %v574_v59 = vadd.f32 %v573_v48, %v572_v21 }
  0x79   : > { %v576_v25 = vsel %vm575_vm2, %v521_v58, %v574_v59 }
  0x7a   : > { %577 = vst [vmem:[%s214_s30] sm:$0x3] %v576_v25 }
  0x7b PF: > { %s13_s12 = sadd.s32 1, %s717_s12  }
  0x7c   : > { %p10_p6 = scmp.ge.s32.totalorder %s13_s12, 4  }
  0x7e   :  { %12 = sbr.rel (!%p10_p6) target bundleno = 1 (0x1), region = 68 }

</bundles_post_ra>
